<compile_context>
chip_gen: v7x
topology: tpu7x:2x2x1
jax: 0.10.0
libtpu: 0.0.40
codegen_flags: <defaults>
</compile_context>

<pallas_src>
import functools

import jax
import jax.numpy as jnp
from jax.experimental import pallas as pl
from jax.experimental.pallas import tpu as pltpu

_SUBLANE = 8
_LANE = 128
_CHUNK_ROWS = 256  # in-kernel accumulation chunk (rows), rounded to row_align


def _ll_poisson_l1_kernel(k_ref, lam_ref, out_ref, *, dt, chunk_rows):
    """Per-block partial sums of  k*log(lam*dt) - lam*dt - |k|.

    k_ref / lam_ref : (block_rows, D) input tiles (any float/int dtype)
    out_ref         : (1, 8, D) f32 partial sums for this block.
    Chunked accumulation keeps intermediates at (chunk_rows, D) granularity.
    """
    block_rows, d = k_ref.shape
    n_chunks = block_rows // chunk_rows

    def chunk_partial(start, rows):
        k = k_ref[pl.ds(start, rows), :].astype(jnp.float32)
        lam = lam_ref[pl.ds(start, rows), :].astype(jnp.float32)
        # dt is folded at trace time (compile-time constant).
        # TODO(synk): if dt ever becomes a traced value, pass it via SMEM.
        if dt == 1.0:
            lam_dt = lam
        else:
            lam_dt = lam * jnp.float32(dt)
        # NOTE: matches the PyTorch reference exactly; lam == 0 gives -inf/NaN
        # there too (no epsilon clamp added here to preserve semantics).
        val = k * jnp.log(lam_dt) - lam_dt - jnp.abs(k)
        # Reduce rows -> 8 sublanes with elementwise (VPU) adds only.
        return val.reshape(rows // _SUBLANE, _SUBLANE, d).sum(axis=0)

    if n_chunks == 1:
        out_ref[0, :, :] = chunk_partial(0, block_rows)
    else:
        def body(c, acc):
            start = pl.multiple_of(c * chunk_rows, chunk_rows)
            return acc + chunk_partial(start, chunk_rows)

        acc = jax.lax.fori_loop(
            0, n_chunks, body,
            jnp.zeros((_SUBLANE, d), jnp.float32),
            unroll=(n_chunks <= 4))
        out_ref[0, :, :] = acc


def _tpu_block_params():
    """Per-generation (target_block_bytes, vmem_limit_bytes)."""
    kind = ""
    try:
        kind = jax.devices()[0].device_kind.lower()
    except Exception:  # pragma: no cover - defensive
        pass
    if "v2" in kind or "v3" in kind:
        return 2 << 20, None            # tiny VMEM chips: stay at defaults
    if "v5" in kind or "v6" in kind:
        return 8 << 20, 80 * 1024 * 1024  # 128 MiB VMEM: big blocks
    # v7x (64 MiB VMEM) and unknown chips: conservative sizing.
    return 4 << 20, 48 * 1024 * 1024


def _choose_tiling(n_rows, n_cols_padded, row_align, target_block_bytes):
    """(block_rows, chunk_rows): block multiple of chunk, chunk of row_align."""
    rows_for_budget = max(
        row_align,
        (target_block_bytes // (n_cols_padded * 4)) // row_align * row_align)
    rows_padded = int(pl.cdiv(n_rows, row_align) * row_align)
    # Keep >= 2 grid steps whenever possible so both v7x TensorCores get work.
    if rows_padded >= 2 * row_align:
        half = int(pl.cdiv(pl.cdiv(rows_padded, 2), row_align) * row_align)
        rows_for_budget = min(rows_for_budget, half)
    block_rows = int(min(rows_for_budget, rows_padded))
    chunk_rows = int(min(_CHUNK_ROWS, block_rows))
    chunk_rows = max(row_align, (chunk_rows // row_align) * row_align)
    block_rows = max(chunk_rows, (block_rows // chunk_rows) * chunk_rows)
    return block_rows, chunk_rows


def loglikelihood_poissonsimple_plusl1(k, lam, dt=1.0):
    """Pallas TPU version of (k*log(lam*dt) - lam*dt - |k|).mean(0).sum()."""
    assert k.shape == lam.shape and k.ndim == 2
    B, D = k.shape
    dt = float(dt)

    # Sublane-packing granularity: 8 rows for 32-bit, 16 for bf16, 32 for int8.
    row_align = max(
        _SUBLANE * max(1, 4 // max(jnp.dtype(k.dtype).itemsize, 1)),
        _SUBLANE * max(1, 4 // max(jnp.dtype(lam.dtype).itemsize, 1)))

    target_block_bytes, vmem_limit = _tpu_block_params()
    d_pad = int(pl.cdiv(D, _LANE) * _LANE)
    block_rows, chunk_rows = _choose_tiling(
        B, d_pad, row_align, target_block_bytes)
    num_blocks = int(pl.cdiv(B, block_rows))
    padded_rows = num_blocks * block_rows

    if padded_rows != B or d_pad != D:
        # Pad k with 0 and lam with 1: each padded element contributes exactly
        # 0*log(dt) - dt - 0 = -dt, corrected analytically below (no in-kernel
        # mask, no masked partial loads/stores).
        k = jnp.pad(k, ((0, padded_rows - B), (0, d_pad - D)))
        lam = jnp.pad(lam, ((0, padded_rows - B), (0, d_pad - D)),
                      constant_values=1)

    kernel = functools.partial(
        _ll_poisson_l1_kernel, dt=dt, chunk_rows=chunk_rows)

    # TODO(synk): sweep pipeline_mode=pl.Buffered(3) on the input specs if a
    # trace shows exposed DMA at grid start; left at the default depth of 2.
    partials = pl.pallas_call(
        kernel,
        out_shape=jax.ShapeDtypeStruct((num_blocks, _SUBLANE, d_pad),
                                       jnp.float32),
        grid_spec=pltpu.PrefetchScalarGridSpec(
            num_scalar_prefetch=0,
            grid=(num_blocks,),
            in_specs=[
                pl.BlockSpec((block_rows, d_pad), lambda i: (i, 0)),
                pl.BlockSpec((block_rows, d_pad), lambda i: (i, 0)),
            ],
            out_specs=pl.BlockSpec((1, _SUBLANE, d_pad), lambda i: (i, 0, 0)),
        ),
        compiler_params=pltpu.CompilerParams(
            dimension_semantics=("parallel",),
            vmem_limit_bytes=vmem_limit,
        ),
    )(k, lam)

    total = jnp.sum(partials, dtype=jnp.float32)
    # Analytic pad correction: every padded element contributed -dt.
    n_pad = padded_rows * d_pad - B * D
    if n_pad:
        total = total + jnp.float32(n_pad) * jnp.float32(dt)
    # mean over dim=0 then sum over features == total_sum / B
    return total / jnp.float32(B)


class LogLikelihoodPoissonSimplePlusL1:
    """JAX/Pallas equivalent of the PyTorch loglikelihood module."""

    def __init__(self, dt=1.0):
        self.dt = dt

    def __call__(self, k, lam):
        return loglikelihood_poissonsimple_plusl1(k, lam, dt=self.dt)


class ConvLFADSLoss:
    """JAX analogue of Conv_LFADS_Loss.forward: recon + kl + l2.

    The Pallas kernel implements the log-likelihood hot path.
    TODO(synk): model.lfads.kl_div() and the GRU hidden_weight_l2_norm() depend
    on model internals not given in the spec; they are passed in as precomputed
    scalars (tiny plain-JAX reductions in a real model).
    """

    def __init__(self, loglikelihood, loss_weight_dict=None,
                 l2_con_scale=0.0, l2_gen_scale=0.0):
        if loss_weight_dict is None:
            loss_weight_dict = {
                'kl': {'weight': 0.0, 'schedule_dur': 2000,
                       'schedule_start': 0, 'max': 1.0, 'min': 0.0},
                'l2': {'weight': 0.0, 'schedule_dur': 2000,
                       'schedule_start': 0, 'max': 1.0, 'min': 0.0},
            }
        self.loglikelihood = loglikelihood
        self.loss_weights = loss_weight_dict
        self.l2_con_scale = l2_con_scale
        self.l2_gen_scale = l2_gen_scale

    def weight_schedule_fn(self, step):
        for key in self.loss_weights:
            w = self.loss_weights[key]
            weight_step = max(step - w['schedule_start'], 0)
            w['weight'] = max(
                min(w['max'] * weight_step / w['schedule_dur'], w['max']),
                w['min'])

    def any_zero_weights(self):
        return any(v['weight'] == 0 for v in self.loss_weights.values())

    def __call__(self, x_orig, x_recon_data, kl_div,
                 gen_hidden_l2_norm, con_hidden_l2_norm=None):
        l2_weight = self.loss_weights['l2']['weight']
        recon_loss = -self.loglikelihood(x_orig, x_recon_data)
        kl_loss = kl_div
        l2_loss = 0.5 * l2_weight * self.l2_gen_scale * gen_hidden_l2_norm
        if con_hidden_l2_norm is not None:
            l2_loss = (l2_loss
                       + 0.5 * l2_weight * self.l2_con_scale * con_hidden_l2_norm)
        loss = recon_loss + kl_loss + l2_loss
        # Keep jnp scalars (no float() -> no device->host sync per step);
        # convert on the host only when logging.
        loss_dict = {'recon': recon_loss, 'kl': kl_loss,
                     'l2': l2_loss, 'total': loss}
        return loss, loss_dict


if __name__ == "__main__":
    key = jax.random.PRNGKey(0)
    k_key, lam_key = jax.random.split(key)

    # --- case 1: aligned shapes, dt == 1 (no padding, >=2 grid steps) ---
    B, D = 16, 256
    k = jax.random.poisson(k_key, lam=2.0, shape=(B, D)).astype(jnp.float32)
    lam = jax.random.uniform(lam_key, (B, D), dtype=jnp.float32,
                             minval=0.1, maxval=5.0)
    ll_module = LogLikelihoodPoissonSimplePlusL1(dt=1.0)
    out = jax.block_until_ready(ll_module(k, lam))
    ref = jnp.sum(jnp.mean(k * jnp.log(lam) - lam - jnp.abs(k), axis=0))
    assert jnp.allclose(out, ref, rtol=1e-4, atol=1e-3), (out, ref)

    # --- case 2: ragged batch AND ragged feature dim, dt != 1
    #     (exercises row + lane padding and the analytic pad correction) ---
    B2, D2, dt2 = 20, 200, 0.01
    k2_key, lam2_key = jax.random.split(jax.random.PRNGKey(1))
    k2 = jax.random.poisson(k2_key, lam=3.0, shape=(B2, D2)).astype(jnp.float32)
    lam2 = jax.random.uniform(lam2_key, (B2, D2), dtype=jnp.float32,
                              minval=0.2, maxval=4.0)
    out2 = jax.block_until_ready(
        loglikelihood_poissonsimple_plusl1(k2, lam2, dt=dt2))
    ref2 = jnp.sum(jnp.mean(k2 * jnp.log(lam2 * dt2) - lam2 * dt2
                            - jnp.abs(k2), axis=0))
    assert jnp.allclose(out2, ref2, rtol=1e-4, atol=1e-3), (out2, ref2)

    # --- case 3: bf16 inputs (half HBM traffic; in-kernel upcast to f32) ---
    B3, D3, dt3 = 24, 256, 0.05
    k3_key, lam3_key = jax.random.split(jax.random.PRNGKey(2))
    k3 = jax.random.poisson(k3_key, lam=2.0, shape=(B3, D3)).astype(jnp.bfloat16)
    lam3 = jax.random.uniform(lam3_key, (B3, D3), dtype=jnp.float32,
                              minval=0.2, maxval=4.0).astype(jnp.bfloat16)
    out3 = jax.block_until_ready(
        loglikelihood_poissonsimple_plusl1(k3, lam3, dt=dt3))
    k3f, lam3f = k3.astype(jnp.float32), lam3.astype(jnp.float32)
    ref3 = jnp.sum(jnp.mean(k3f * jnp.log(lam3f * dt3) - lam3f * dt3
                            - jnp.abs(k3f), axis=0))
    assert jnp.allclose(out3, ref3, rtol=1e-3, atol=1e-2), (out3, ref3)

    # --- full Conv_LFADS_Loss-style combination (kl/l2 as provided scalars) ---
    loss_module = ConvLFADSLoss(ll_module, l2_gen_scale=0.1)
    loss, loss_dict = loss_module(k, lam, kl_div=jnp.float32(0.0),
                                  gen_hidden_l2_norm=jnp.float32(0.0))
    loss = jax.block_until_ready(loss)
    assert jnp.allclose(loss, -ref, rtol=1e-4, atol=1e-3), (loss, -ref)

    print("KERNEL_OK")
</pallas_src>

<mosaic_0001>
module attributes {stable_mosaic.version = 11 : i64} {
  func.func @_ll_poisson_l1_kernel(%arg0: i32, %arg1: memref<8x256xf32, #tpu.memory_space<vmem>>, %arg2: memref<8x256xf32, #tpu.memory_space<vmem>>, %arg3: memref<1x8x256xf32, #tpu.memory_space<vmem>>) attributes {dimension_semantics = [#tpu.dimension_semantics<parallel>], iteration_bounds = array<i64: 2>, scalar_prefetch = 0 : i64, scratch_operands = 0 : i64, tpu.core_type = #tpu.core_type<tc>, window_params = [{transform_indices = @transform_0, window_bounds = array<i64: 8, 256>}, {transform_indices = @transform_1, window_bounds = array<i64: 8, 256>}, {transform_indices = @transform_2, window_bounds = array<i64: 1, 8, 256>}]} {
    %c0 = arith.constant 0 : index
    %c0_0 = arith.constant 0 : index
    %0 = vector.load %arg1[%c0, %c0_0] : memref<8x256xf32, #tpu.memory_space<vmem>>, vector<8x256xf32>
    %c0_1 = arith.constant 0 : index
    %c0_2 = arith.constant 0 : index
    %1 = vector.load %arg2[%c0_1, %c0_2] : memref<8x256xf32, #tpu.memory_space<vmem>>, vector<8x256xf32>
    %2 = math.log %1 : vector<8x256xf32>
    %3 = arith.mulf %0, %2 : vector<8x256xf32>
    %4 = arith.subf %3, %1 : vector<8x256xf32>
    %5 = math.absf %0 : vector<8x256xf32>
    %6 = arith.subf %4, %5 : vector<8x256xf32>
    %7 = vector.shape_cast %6 : vector<8x256xf32> to vector<1x8x256xf32>
    %cst = arith.constant dense<0.000000e+00> : vector<8x256xf32>
    %8 = vector.multi_reduction <add>, %7, %cst [0] : vector<1x8x256xf32> to vector<8x256xf32>
    %c0_3 = arith.constant 0 : index
    %c0_4 = arith.constant 0 : index
    %c0_5 = arith.constant 0 : index
    %9 = vector.load %arg3[%c0_3, %c0_4, %c0_5] : memref<1x8x256xf32, #tpu.memory_space<vmem>>, vector<1x8x256xf32>
    %10 = vector.shape_cast %9 : vector<1x8x256xf32> to vector<8x256xf32>
    %11 = vector.shape_cast %8 : vector<8x256xf32> to vector<1x8x256xf32>
    tpu.vector_store %arg3[%c0_3, %c0_4, %c0_5], %11 {strides = array<i32>} : memref<1x8x256xf32, #tpu.memory_space<vmem>>, vector<1x8x256xf32>,
    return
  }
  func.func @transform_0(%arg0: i32) -> (i32, i32) {
    %c0_i32 = arith.constant 0 : i32
    %c0_i32_0 = arith.constant 0 : i32
    return %arg0, %c0_i32 : i32, i32
  }
  func.func @transform_1(%arg0: i32) -> (i32, i32) {
    %c0_i32 = arith.constant 0 : i32
    %c0_i32_0 = arith.constant 0 : i32
    return %arg0, %c0_i32 : i32, i32
  }
  func.func @transform_2(%arg0: i32) -> (i32, i32, i32) {
    %c0_i32 = arith.constant 0 : i32
    %c0_i32_0 = arith.constant 0 : i32
    %c0_i32_1 = arith.constant 0 : i32
    return %arg0, %c0_i32, %c0_i32_0 : i32, i32, i32
  }
}

</mosaic_0001>

<bundles_post_ra>
// kernel: tpu_custom_call.1
= control target key start
LH: loop header
LB: loop body
LE: loop exit
PB: predicated region body
PF: predicated region fallthrough
CT: control target
= control target key end

     0   :  { %7 = vsyncpa [#allocation3], 0  ;;  %s761_s0 = inlined_call_operand.hbm [shape: f32[16,256], index: 0, kind: input, shape index: {}]   ;;  %s762_s1 = inlined_call_operand.hbm [shape: f32[16,256], index: 1, kind: input, shape index: {}]   ;;  %s763_s2 = inlined_call_operand.hbm [shape: f32[2,8,256], index: 2, kind: output, shape index: {}]  }
   0x1   :  { %9 = vsyncpa [#allocation3 + $0x1], 0 }
   0x2   :  { %10 = vsyncpa [#allocation6], 0 }
   0x3   :  { %12 = vsyncpa [#allocation6 + $0x1], 0 }
   0x4   :  { %13 = vsyncpa [#allocation4], 0 }
   0x5   :  { %15 = vsyncpa [#allocation4 + $0x1], 0  ;;  %s552_s9 = smov 0   ;;  %s554_s10 = smov 0  }
   0x6   :  { %s556_s11 = smov 0   ;;  %s558_s12 = smov 0  }
   0x7 LB: > { %s573_s13 = sadd.s32 4294967295, %s532_s12   ;;  %s326_s14 = sadd.s32 4294967294, %s532_s12   ;;  %s532_s12 = sphi %s558_s12, %s782_s12   ;;  %s528_s11 = sphi %s556_s11, %s781_s11   ;;  %s524_s10 = sphi %s554_s10, %s780_s10   ;;  %s520_s9 = sphi %s552_s9, %s779_s9  }
   0x8   : > { %s577_s15 = sadd.s32 1, %s532_s12   ;;  %s28_s16 = sadd.s32 1, %s528_s11 }
   0x9   : > { %s25_s17 = ssub.s32 %s532_s12, %s577_s15  ;;  %p35_p0 = scmp.ne.s32.totalorder %s528_s11, %s524_s10 }
   0xa   : > { %p26_p1 = scmp.eq.s32.totalorder %s25_s17, 0  ;;  %p36_p2 = scmp.eq.s32.totalorder %s532_s12, 0 }
   0xb   : > { %p41_p3 = scmp.ne.s32.totalorder %s524_s10, %s520_s9  ;;  %p42_p4 = scmp.eq.s32.totalorder %s573_s13, 0 }
   0xc   : > { %s589_s18 = scalar_select %p26_p1, %s528_s11, %s28_s16  }
   0xd   : > { %p591_p5 = por %p36_p2, %p35_p0  ;;  %p595_p6 = por %p42_p4, %p41_p3 }
   0xe   : > { %p91_p7 = scmp.eq.s32.totalorder %s573_s13, 1  ;;  %p97_p8 = scmp.eq.s32.totalorder %s326_s14, 1 }
   0xf   : > { %s767_s20 = scalar_select %p595_p6, 1, 0 }
  0x10   : > { %p364_p10 = scmp.lt.s32.totalorder %s532_s12, 2  ;;  %p602_p11 = por %p91_p7, %p35_p0 }
  0x11   : > { %p606_p12 = por %p97_p8, %p41_p3  ;;  %s611_s23 = sand.u32 1, %s528_s11  }
  0x12   : > { %s768_s21 = scalar_select %p602_p11, 1, 0 }
  0x13   : > { %s769_s22 = scalar_select %p606_p12, 1, 0 }
  0x14   : > { %s344_s24 = sshll.u32 %s532_s12, 8  ;;  %s329_s25 = sshll.u32 %s611_s23, 4 }
  0x15   : > { %s620_s28 = scalar_lea.hbm %s761_s0, %s344_s24  ;;  %s121_s29 = scalar_lea.vmem [#allocation2], %s329_s25 }
  0x16   : > { %s129_s30 = sshll.u32 %s121_s29, 4  ;;  %p626_p13 = pnand %p364_p10, %p591_p5  ;;  %s630_s30 = int_to_ptr.vmem [resolvable:$true] %s129_s30 }
  0x17   : > { %s118_s4 = scalar_lea.sflag [#allocation3], %s611_s23  ;;  %s402_s5 = scalar_lea.hbm %s620_s28, 256 }
  0x18   : > { %p403_p2 = scmp.ne.s32.totalorder %s620_s28, %s402_s5  ;;  %p404_p3 = pneg %p626_p13 }
  0x19   : > { %s407_s8 = scalar_lea.hbm %s761_s0, 512  ;;  %p408_p5 = scmp.lt.u32.totalorder %s620_s28, %s761_s0 }
  0x1a   : > { %p405_p4 = pnand %p404_p3, %p403_p2  ;;  %p409_p8 = scmp.lt.u32.totalorder %s407_s8, %s402_s5 }
  0x1b   : > { %p411_p9 = scmp.lt.u32.totalorder %s402_s5, %s620_s28 }
  0x1c   : > { %p406_p7 = pneg %p405_p4  ;;  %p410_p10 = por %p409_p8, %p408_p5 }
  0x1e   : > { %p412_p0 = por %p411_p9, %p410_p10 }
  0x20   : > { %p413_p1 = pnand %p412_p0, %p406_p7 }
  0x22   : > { %416 = shalt.err (!%p413_p1)
}
  0x23   : > { %s417_s17 = scalar_lea.vmem %s630_s30, 256  ;;  %s534_s19 = smov [#allocation2]  }
  0x24   : > { %p418_p2 = scmp.ne.s32.totalorder %s630_s30, %s417_s17  ;;  %s422_s26 = sshll.u32 %s534_s19, 4  ;;  %s423_s26 = int_to_ptr.vmem [resolvable:$false] %s422_s26 }
  0x25   : > { %s424_s27 = scalar_lea.vmem %s423_s26, 512  ;;  %p425_p11 = scmp.lt.s32.totalorder %s630_s30, %s423_s26 }
  0x26   : > { %p420_p4 = pnand %p418_p2, %p404_p3  ;;  %p426_p5 = scmp.lt.s32.totalorder %s424_s27, %s417_s17 }
  0x28   : > { %p421_p12 = pneg %p420_p4  ;;  %p427_p8 = por %p426_p5, %p425_p11 }
  0x2a   : > { %p428_p9 = pnand %p427_p8, %p421_p12 }
  0x2c   : > { %431 = shalt.err (!%p428_p9)
}
  0x2d   : > { %356 = dma.hbm_to_vmem [thread:$0]  (!%p626_p13), %s620_s28, 256, %s630_s30, %s118_s4  }
  0x2e   : > { %p771_p0 = scmp.lt.s32.totalorder %s532_s12, 3  ;;  %p772_p1 = scmp.ge.s32.totalorder %s532_s12, 1 }
  0x2f   : > { %s673_s7 = scalar_lea.hbm %s762_s1, %s344_s24  ;;  %s140_s8 = scalar_lea.vmem [#allocation5], %s329_s25 }
  0x30   : > { %p664_p7 = pnand %p772_p1, %p771_p0  ;;  %s148_s14 = sshll.u32 %s140_s8, 4  ;;  %s149_s14 = int_to_ptr.vmem [resolvable:$true] %s148_s14 }
  0x31   : > { %s137_s28 = scalar_lea.sflag [#allocation6], %s611_s23  ;;  %s432_s30 = scalar_lea.hbm %s673_s7, 256 }
  0x32   : > { %s773_s29 = scalar_select %p664_p7, 1, 0 }
  0x33   : > { %p433_p11 = scmp.ne.s32.totalorder %s673_s7, %s432_s30  ;;  %s437_s24 = scalar_lea.hbm %s762_s1, 512 }
  0x34   : > { %p438_p2 = scmp.lt.u32.totalorder %s673_s7, %s762_s1  ;;  %p439_p4 = scmp.lt.u32.totalorder %s437_s24, %s432_s30 }
  0x35   : > { %p435_p12 = pnand %p433_p11, %p404_p3  ;;  %p441_p8 = scmp.lt.u32.totalorder %s432_s30, %s673_s7 }
  0x36   : > { %p440_p5 = por %p439_p4, %p438_p2 }
  0x37   : > { %p436_p10 = pneg %p435_p12 }
  0x38   : > { %p442_p9 = por %p441_p8, %p440_p5 }
  0x3a   : > { %p443_p0 = pnand %p442_p9, %p436_p10 }
  0x3c   : > { %446 = shalt.err (!%p443_p0)
}
  0x3d   : > { %s447_s23 = scalar_lea.vmem %s149_s14, 256  ;;  %s535_s25 = smov [#allocation5]  }
  0x3e   : > { %p448_p1 = scmp.ne.s32.totalorder %s149_s14, %s447_s23  ;;  %s452_s26 = sshll.u32 %s535_s25, 4  ;;  %s453_s26 = int_to_ptr.vmem [resolvable:$false] %s452_s26 }
  0x3f   : > { %s454_s27 = scalar_lea.vmem %s453_s26, 512  ;;  %p455_p6 = scmp.lt.s32.totalorder %s149_s14, %s453_s26 }
  0x40   : > { %p450_p11 = pnand %p448_p1, %p404_p3  ;;  %p456_p7 = scmp.lt.s32.totalorder %s454_s27, %s447_s23 }
  0x42   : > { %p451_p12 = pneg %p450_p11  ;;  %p457_p2 = por %p456_p7, %p455_p6 }
  0x44   : > { %p458_p4 = pnand %p457_p2, %p451_p12 }
  0x46   : > { %461 = shalt.err (!%p458_p4)
}
  0x47   : > { %359 = dma.hbm_to_vmem [thread:$0]  (!%p626_p13), %s673_s7, 256, %s149_s14, %s137_s28  }
  0x48   : > { %p774_p10 = scmp.ne.s32.totalorder %s773_s29, 0 }
  0x49   : > { %s700_s5 = sand.u32 (!%p774_p10), 1, %s524_s10   ;;  %p775_p3 = scmp.ne.s32.totalorder (!%p774_p10), %s767_s20, 0 }
  0x4a   : > { %157 = sbr.rel (%p774_p10) target bundleno = 119 (0x77), region = 28  ;;  %s336_s6 = sshll.u32 (!%p774_p10), %s700_s5, 4 }
  0x4b   : > { %s160_s8 = scalar_lea.sflag (!%p774_p10), [#allocation3], %s700_s5  ;;  %s163_s30 = scalar_lea.vmem (!%p774_p10), [#allocation2], %s336_s6 }
  0x51   : > { %507 = dma.done.wait (%p775_p3), %s160_s8, 256  }
  0x52   : > { %509 = vsyncadd (%p775_p3), %s160_s8, 4294967040  ;;  %s169_s3 = scalar_lea.sflag [#allocation6], %s700_s5  ;;  %s172_s7 = scalar_lea.vmem [#allocation5], %s336_s6 }
  0x53   : > { %511 = dma.done.wait (%p775_p3), %s169_s3, 256  }
  0x54   : > { %513 = vsyncadd (%p775_p3), %s169_s3, 4294967040  ;;  %v200_v0 = vld [vmem:[%s172_s7] sm:$0xff]  ;;  %v201_v1 = vld [vmem:[%s172_s7 + $0x8] sm:$0xff]  ;;  %s197_s20 = scalar_lea.vmem [#allocation7], %s336_s6  ;;  %s346_s14 = sshll.u32 %s573_s13, 8 }
  0x55   : > { %398 = vlog2.f32 %v200_v0  ;;  %v198_v3 = vld [vmem:[%s163_s30] sm:$0xff]  ;;  %v199_v6 = vld [vmem:[%s163_s30 + $0x8] sm:$0xff]  ;;  %s233_s29 = sshll.u32 %s197_s20, 4  ;;  %s719_s16 = scalar_lea.hbm %s763_s2, %s346_s14  ;;  %s714_s29 = int_to_ptr.vmem [resolvable:$true] %s233_s29 }
  0x56   : > { %400 = vlog2.f32 %v201_v1  ;;  %v210_v9 = vand.u32 2147483647, %v198_v3  ;;  %v211_v11 = vand.u32 2147483647, %v199_v6  ;;  %s219_s24 = scalar_lea.sflag [#allocation4], %s700_s5  ;;  %s462_s17 = scalar_lea.vmem %s714_s29, 256 }
  0x57   : > { %p463_p6 = scmp.ne.s32.totalorder %s714_s29, %s462_s17  ;;  %p776_p13 = scmp.ne.s32.totalorder %s768_s21, 0 }
  0x58   : > { %s536_s13 = smov [#allocation7]  }
  0x59   : > { %p464_p7 = pnand %p463_p6, %p776_p13  ;;  %s466_s19 = sshll.u32 %s536_s13, 4  ;;  %s467_s19 = int_to_ptr.vmem [resolvable:$false] %s466_s19 }
  0x5a   : > { %s468_s23 = scalar_lea.vmem %s467_s19, 512  ;;  %p469_p8 = scmp.lt.s32.totalorder %s714_s29, %s467_s19 }
  0x5b   : > { %p465_p5 = pneg %p464_p7  ;;  %p470_p9 = scmp.lt.s32.totalorder %s468_s23, %s462_s17 }
  0x5d   : > { %p471_p0 = por %p470_p9, %p469_p8 }
  0x5f   : > { %v399_v2 = vpop.eup %398  ;;  %p472_p1 = pnand %p471_p0, %p465_p5 }
  0x60   : > { %v401_v4 = vpop.eup %400  ;;  %v203_v5 = vmul.f32 0.6931472, %v399_v2 }
  0x61   : > { %v205_v7 = vmul.f32 0.6931472, %v401_v4 }
  0x62   : > { %v206_v8 = vmul.f32 %v203_v5, %v198_v3 }
  0x63   : > { %v207_v10 = vmul.f32 %v205_v7, %v199_v6 }
  0x64   : > { %v208_v12 = vsub.f32 %v206_v8, %v200_v0 }
  0x65   : > { %v209_v13 = vsub.f32 %v207_v10, %v201_v1 }
  0x66   : > { %v212_v14 = vsub.f32 %v208_v12, %v210_v9 }
  0x67   : > { %v213_v15 = vsub.f32 %v209_v13, %v211_v11 }
  0x68   : > { %216 = vst [vmem:[%s197_s20] sm:$0xff] %v212_v14 }
  0x69   : > { %217 = vst [vmem:[%s197_s20 + $0x8] sm:$0xff] %v213_v15 }
  0x6a   : > { %475 = shalt.err (!%p472_p1)
}
  0x6b   : > { %s476_s25 = scalar_lea.hbm %s719_s16, 256  ;;  %s480_s5 = scalar_lea.hbm %s763_s2, 512 }
  0x6c   : > { %p477_p11 = scmp.ne.s32.totalorder %s719_s16, %s476_s25  ;;  %p481_p4 = scmp.lt.u32.totalorder %s719_s16, %s763_s2 }
  0x6d   : > { %p482_p10 = scmp.lt.u32.totalorder %s480_s5, %s476_s25  ;;  %p484_p6 = scmp.lt.u32.totalorder %s476_s25, %s719_s16 }
  0x6e   : > { %p478_p12 = pnand %p477_p11, %p776_p13 }
  0x6f   : > { %p483_p3 = por %p482_p10, %p481_p4 }
  0x70   : > { %p479_p2 = pneg %p478_p12 }
  0x71   : > { %p485_p7 = por %p484_p6, %p483_p3 }
  0x73   : > { %p486_p5 = pnand %p485_p7, %p479_p2 }
  0x75   : > { %489 = shalt.err (!%p486_p5)
}
  0x76   : > { %351 = dma.vmem_to_hbm [thread:$0]  (%p776_p13), %s714_s29, 256, %s719_s16, %s219_s24  }
  0x77 PF: > { %s245_s30 = sand.u32 1, %s520_s9   ;;  %p777_p8 = scmp.ne.s32.totalorder %s769_s22, 0 }
  0x78   : > { %p778_p9 = scmp.ge.s32.totalorder %s532_s12, 2  ;;  %s246_s3 = scalar_lea.sflag [#allocation4], %s245_s30 }
  0x7a   : > { %p361_p0 = pnand %p778_p9, %p777_p8 }
  0x7c   : > { %515 = dma.done.wait (!%p361_p0), %s246_s3, 256  }
  0x7d   : > { %517 = vsyncadd (!%p361_p0), %s246_s3, 4294967040  ;;  %p18_p1 = scmp.ge.s32.totalorder %s577_s15, 4   ;;  %s779_s9 = smov %s524_s10 }
  0x7e   : > { %s780_s10 = smov %s528_s11  ;;  %s781_s11 = smov %s589_s18 }
  0x7f   : > { %s782_s12 = smov %s577_s15  ;;  %20 = sbr.rel (!%p18_p1) target bundleno = 7 (0x7), region = 86 }
  0x86   :  { %251 = vsyncpa [#allocation3], 1 }
  0x87   :  { %253 = vsyncpa [#allocation3 + $0x1], 1 }
  0x88   :  { %254 = vsyncpa [#allocation6], 1 }
  0x89   :  { %256 = vsyncpa [#allocation6 + $0x1], 1 }
  0x8a   :  { %257 = vsyncpa [#allocation4], 1 }
  0x8b   :  { %259 = vsyncpa [#allocation4 + $0x1], 1 }

</bundles_post_ra>
